<compile_context>
chip_gen: v5e
topology: v5e:2x2
jax: 0.10.0
libtpu: 0.0.40
codegen_flags: <defaults>
</compile_context>

<pallas_src>
import jax
import jax.numpy as jnp
from jax.experimental import pallas as pl
from jax.experimental.pallas import tpu as pltpu


_LANE = 128      # lane-axis tile (last dim)
_SUBLANE = 8     # f32 sublane tile (second-to-last dim)


def _cdiv(a, b):
    return (a + b - 1) // b


def _round_up(x, m):
    return ((x + m - 1) // m) * m


def _pad2d(a, rows, cols, dtype):
    """Zero-pad a 2-D array up to (rows, cols) and cast."""
    return jnp.pad(a, ((0, rows - a.shape[0]), (0, cols - a.shape[1]))).astype(dtype)


def _qnet_kernel(x_ref, w1_ref, b1_ref, w2_ref, b2_ref, w3_ref, b3_ref,
                 out_ref, xpad_ref):
    din = x_ref.shape[-1]        # logical input features (e.g. 11)
    d_p = xpad_ref.shape[-1]     # lane-padded input features (e.g. 128)

    if din < d_p:
        # Pad the input lanes to a 128-multiple inside VMEM (VPU/VMEM ports
        # have huge slack) instead of streaming padded lanes from HBM.
        # Pad lanes are re-zeroed every step: correct under "parallel"
        # (megacore) sharding where a core may never execute step 0.
        xpad_ref[...] = jnp.zeros_like(xpad_ref)
        xpad_ref[:, :din] = x_ref[...]
        x = xpad_ref[...]
    else:
        x = x_ref[...]

    h1 = jnp.dot(x, w1_ref[...], preferred_element_type=jnp.float32) + b1_ref[...]
    h1 = jnp.maximum(h1, 0.0)

    h2 = jnp.dot(h1.astype(jnp.bfloat16), w2_ref[...],
                 preferred_element_type=jnp.float32) + b2_ref[...]
    h2 = jnp.maximum(h2, 0.0)

    out = jnp.dot(h2.astype(jnp.bfloat16), w3_ref[...],
                  preferred_element_type=jnp.float32) + b3_ref[...]

    # Store only the logical action columns; out_ref's last dim equals the full
    # (unpadded) array dim, so HBM writeback is just B x n_actions floats.
    n_act = out_ref.shape[-1]
    out_ref[...] = out[:, :n_act].astype(out_ref.dtype)


def linear_qnet_forward(state, params, *, tile_b=None):
    """Fused Linear_QNet forward as a batch-tiled Pallas TPU kernel.

    state : f32[B, input_dims]
    params: (w1[Din,H1], b1[1,H1], w2[H1,H2], b2[1,H2], w3[H2,A], b3[1,A]) f32
            (weights stored as [in, out]; identical math to x @ W.T + b)
    returns f32[B, n_actions]

    Call under jax.jit (static_argnames=("tile_b",)) so the cast / weight pads /
    pallas_call stay on-device back-to-back.
    """
    w1, b1, w2, b2, w3, b3 = params
    B, input_dims = state.shape
    h1_dim, h2_dim, n_actions = w1.shape[1], w2.shape[1], w3.shape[1]

    # Hardware-aligned (padded) feature sizes used *inside* the kernel / for
    # the tiny VMEM-resident weights only.  128 (not 256) per review.
    d_p = _round_up(input_dims, _LANE)
    h1_p = _round_up(h1_dim, _LANE)
    h2_p = _round_up(h2_dim, _LANE)
    n_p = _round_up(n_actions, _LANE)

    # Batch tile: multiple of 8, aim for >=4 grid steps, cap at 2048 rows so
    # all buffers + intermediates stay well under even v5e's default scoped
    # VMEM while amortizing the ~0.35 us/step grid overhead.
    if tile_b is None:
        tile_b = min(2048, _round_up(max(_cdiv(B, 4), 1), _SUBLANE))
    tile_b = max(_SUBLANE, _round_up(tile_b, _SUBLANE))
    grid = (_cdiv(B, tile_b),)

    # x streams as bf16 with only the logical feature lanes and no batch
    # padding; a ragged last tile is handled by Pallas boundary masking
    # (garbage pad rows are row-independent and their output rows are dropped).
    x_bf16 = state.astype(jnp.bfloat16)

    # Weights/biases zero-padded to (8,128)-aligned tiles (few tens of KiB,
    # done under the caller's jit); constant index_map keeps them VMEM-resident.
    w1_p = _pad2d(w1, d_p, h1_p, jnp.bfloat16)
    w2_p = _pad2d(w2, h1_p, h2_p, jnp.bfloat16)
    w3_p = _pad2d(w3, h2_p, n_p, jnp.bfloat16)
    b1_p = _pad2d(b1, 1, h1_p, jnp.float32)
    b2_p = _pad2d(b2, 1, h2_p, jnp.float32)
    b3_p = _pad2d(b3, 1, n_p, jnp.float32)

    return pl.pallas_call(
        _qnet_kernel,
        out_shape=jax.ShapeDtypeStruct((B, n_actions), jnp.float32),
        grid_spec=pltpu.PrefetchScalarGridSpec(
            num_scalar_prefetch=0,
            grid=grid,
            in_specs=[
                # x: streamed per batch tile, last dim = full (unpadded) extent.
                pl.BlockSpec((tile_b, input_dims), lambda i: (i, 0)),
                pl.BlockSpec((d_p, h1_p), lambda i: (0, 0)),   # w1 resident
                pl.BlockSpec((1, h1_p), lambda i: (0, 0)),     # b1 resident
                pl.BlockSpec((h1_p, h2_p), lambda i: (0, 0)),  # w2 resident
                pl.BlockSpec((1, h2_p), lambda i: (0, 0)),     # b2 resident
                pl.BlockSpec((h2_p, n_p), lambda i: (0, 0)),   # w3 resident
                pl.BlockSpec((1, n_p), lambda i: (0, 0)),      # b3 resident
            ],
            # Output last dim = full (unpadded) n_actions -> minimal writeback.
            out_specs=pl.BlockSpec((tile_b, n_actions), lambda i: (i, 0)),
            scratch_shapes=[pltpu.VMEM((tile_b, d_p), jnp.bfloat16)],
        ),
        compiler_params=pltpu.CompilerParams(
            dimension_semantics=("parallel",),     # batch tiles shard across TCs
            vmem_limit_bytes=32 * 1024 * 1024,
        ),
    )(x_bf16, w1_p, b1_p, w2_p, b2_p, w3_p, b3_p)


def init_params(key, input_dims, hidden_dim1, hidden_dim2, n_actions):
    """Deterministic init mimicking PyTorch nn.Linear default
    (U[-1/sqrt(fan_in), 1/sqrt(fan_in)]).  Weights stored as [in, out]."""
    keys = jax.random.split(key, 6)

    def layer(kw, kb, fan_in, fan_out):
        bound = 1.0 / jnp.sqrt(fan_in)
        w = jax.random.uniform(kw, (fan_in, fan_out), jnp.float32, -bound, bound)
        b = jax.random.uniform(kb, (1, fan_out), jnp.float32, -bound, bound)
        return w, b

    w1, b1 = layer(keys[0], keys[1], input_dims, hidden_dim1)
    w2, b2 = layer(keys[2], keys[3], hidden_dim1, hidden_dim2)
    w3, b3 = layer(keys[4], keys[5], hidden_dim2, n_actions)
    return (w1, b1, w2, b2, w3, b3)


def _mixed_precision_reference(state, params):
    """Reference with the kernel's precision policy: bf16 MXU operands,
    f32 accumulation, f32 bias-add / ReLU."""
    w1, b1, w2, b2, w3, b3 = params

    def mm(a, w):
        return jax.lax.dot(a.astype(jnp.bfloat16), w.astype(jnp.bfloat16),
                           preferred_element_type=jnp.float32)

    h1 = jnp.maximum(mm(state, w1) + b1, 0.0)
    h2 = jnp.maximum(mm(h1, w2) + b2, 0.0)
    return mm(h2, w3) + b3


def _f32_reference(state, params):
    """Full-f32 reference (matches the PyTorch module semantics)."""
    w1, b1, w2, b2, w3, b3 = params
    h1 = jnp.maximum(state @ w1 + b1, 0.0)
    h2 = jnp.maximum(h1 @ w2 + b2, 0.0)
    return h2 @ w3 + b3


if __name__ == "__main__":
    # Small DDQN-style config: 11-dim state, two 32-wide hidden layers, 3 actions.
    B, input_dims, hidden_dim1, hidden_dim2, n_actions = 2, 11, 32, 32, 3

    key = jax.random.PRNGKey(0)
    key_x, key_p, key_x2 = jax.random.split(key, 3)

    state = jax.random.normal(key_x, (B, input_dims), dtype=jnp.float32)
    params = init_params(key_p, input_dims, hidden_dim1, hidden_dim2, n_actions)

    # One jit over the whole forward (cast + weight pad + pallas_call).
    fwd = jax.jit(linear_qnet_forward, static_argnames=("tile_b",))

    # Toy single-step batch (B=2 -> one 8-row tile, partial boundary block).
    out = jax.block_until_ready(fwd(state, params))
    assert out.shape == (B, n_actions)

    ref_mixed = _mixed_precision_reference(state, params)
    assert jnp.allclose(out, ref_mixed, atol=1e-4, rtol=1e-4), "mixed-precision mismatch"

    ref_f32 = _f32_reference(state, params)
    assert jnp.allclose(out, ref_f32, atol=1e-1, rtol=1e-1), "semantic mismatch vs f32 reference"

    # Larger batch exercising multiple grid steps, including a ragged last
    # tile (40 rows, tile_b=16 -> 3 tiles, last one half-full).
    state_big = jax.random.normal(key_x2, (40, input_dims), dtype=jnp.float32)
    out_big = jax.block_until_ready(fwd(state_big, params, tile_b=16))
    assert out_big.shape == (40, n_actions)
    ref_big = _mixed_precision_reference(state_big, params)
    assert jnp.allclose(out_big, ref_big, atol=1e-4, rtol=1e-4), "multi-tile mismatch"

    print("KERNEL_OK")
</pallas_src>

<mosaic_0001>
module attributes {stable_mosaic.version = 11 : i64} {
  func.func @_qnet_kernel(%arg0: i32, %arg1: memref<8x11xbf16, #tpu.memory_space<vmem>>, %arg2: memref<128x128xbf16, #tpu.memory_space<vmem>>, %arg3: memref<1x128xf32, #tpu.memory_space<vmem>>, %arg4: memref<128x128xbf16, #tpu.memory_space<vmem>>, %arg5: memref<1x128xf32, #tpu.memory_space<vmem>>, %arg6: memref<128x128xbf16, #tpu.memory_space<vmem>>, %arg7: memref<1x128xf32, #tpu.memory_space<vmem>>, %arg8: memref<8x3xf32, #tpu.memory_space<vmem>>, %arg9: memref<8x128xbf16, #tpu.memory_space<vmem>>) attributes {dimension_semantics = [#tpu.dimension_semantics<parallel>], iteration_bounds = array<i64: 1>, scalar_prefetch = 0 : i64, scratch_operands = 1 : i64, tpu.core_type = #tpu.core_type<tc>, window_params = [{transform_indices = @transform_0, window_bounds = array<i64: 8, 11>}, {pipeline_mode = #tpu.pipeline_mode<synchronous>, transform_indices = @transform_1, window_bounds = array<i64: 128, 128>}, {pipeline_mode = #tpu.pipeline_mode<synchronous>, transform_indices = @transform_2, window_bounds = array<i64: 1, 128>}, {pipeline_mode = #tpu.pipeline_mode<synchronous>, transform_indices = @transform_3, window_bounds = array<i64: 128, 128>}, {pipeline_mode = #tpu.pipeline_mode<synchronous>, transform_indices = @transform_4, window_bounds = array<i64: 1, 128>}, {pipeline_mode = #tpu.pipeline_mode<synchronous>, transform_indices = @transform_5, window_bounds = array<i64: 128, 128>}, {pipeline_mode = #tpu.pipeline_mode<synchronous>, transform_indices = @transform_6, window_bounds = array<i64: 1, 128>}, {transform_indices = @transform_7, window_bounds = array<i64: 8, 3>}]} {
    %cst = arith.constant 0.000000e+00 : bf16
    %0 = vector.broadcast %cst : bf16 to vector<8x128xbf16>
    %c0 = arith.constant 0 : index
    %c0_0 = arith.constant 0 : index
    %1 = vector.load %arg9[%c0, %c0_0] : memref<8x128xbf16, #tpu.memory_space<vmem>>, vector<8x128xbf16>
    tpu.vector_store %arg9[%c0, %c0_0], %0 {strides = array<i32>} : memref<8x128xbf16, #tpu.memory_space<vmem>>, vector<8x128xbf16>,
    %c0_1 = arith.constant 0 : index
    %c0_2 = arith.constant 0 : index
    %2 = vector.load %arg1[%c0_1, %c0_2] : memref<8x11xbf16, #tpu.memory_space<vmem>>, vector<8x11xbf16>
    %c0_3 = arith.constant 0 : index
    %c0_4 = arith.constant 0 : index
    %3 = vector.load %arg9[%c0_3, %c0_4] : memref<8x128xbf16, #tpu.memory_space<vmem>>, vector<8x11xbf16>
    tpu.vector_store %arg9[%c0_3, %c0_4], %2 {strides = array<i32>} : memref<8x128xbf16, #tpu.memory_space<vmem>>, vector<8x11xbf16>,
    %c0_5 = arith.constant 0 : index
    %c0_6 = arith.constant 0 : index
    %4 = vector.load %arg9[%c0_5, %c0_6] : memref<8x128xbf16, #tpu.memory_space<vmem>>, vector<8x128xbf16>
    %c0_7 = arith.constant 0 : index
    %c0_8 = arith.constant 0 : index
    %5 = vector.load %arg2[%c0_7, %c0_8] : memref<128x128xbf16, #tpu.memory_space<vmem>>, vector<128x128xbf16>
    %cst_9 = arith.constant dense<0.000000e+00> : vector<8x128xf32>
    %6 = tpu.matmul %4, %5, %cst_9 {dimension_numbers = #tpu.dot_dimension_numbers<[1], [0], [0], [1], [0, 0, 1, 1], [], []>} : vector<8x128xbf16>, vector<128x128xbf16>, vector<8x128xf32> -> vector<8x128xf32>
    %c0_10 = arith.constant 0 : index
    %c0_11 = arith.constant 0 : index
    %7 = vector.load %arg3[%c0_10, %c0_11] : memref<1x128xf32, #tpu.memory_space<vmem>>, vector<1x128xf32>
    %8 = vector.broadcast %7 : vector<1x128xf32> to vector<8x128xf32>
    %9 = arith.addf %6, %8 : vector<8x128xf32>
    %cst_12 = arith.constant 0.000000e+00 : f32
    %10 = vector.broadcast %cst_12 : f32 to vector<8x128xf32>
    %11 = arith.maximumf %9, %10 : vector<8x128xf32>
    %12 = arith.truncf %11 : vector<8x128xf32> to vector<8x128xbf16>
    %c0_13 = arith.constant 0 : index
    %c0_14 = arith.constant 0 : index
    %13 = vector.load %arg4[%c0_13, %c0_14] : memref<128x128xbf16, #tpu.memory_space<vmem>>, vector<128x128xbf16>
    %cst_15 = arith.constant dense<0.000000e+00> : vector<8x128xf32>
    %14 = tpu.matmul %12, %13, %cst_15 {dimension_numbers = #tpu.dot_dimension_numbers<[1], [0], [0], [1], [0, 0, 1, 1], [], []>} : vector<8x128xbf16>, vector<128x128xbf16>, vector<8x128xf32> -> vector<8x128xf32>
    %c0_16 = arith.constant 0 : index
    %c0_17 = arith.constant 0 : index
    %15 = vector.load %arg5[%c0_16, %c0_17] : memref<1x128xf32, #tpu.memory_space<vmem>>, vector<1x128xf32>
    %16 = vector.broadcast %15 : vector<1x128xf32> to vector<8x128xf32>
    %17 = arith.addf %14, %16 : vector<8x128xf32>
    %cst_18 = arith.constant 0.000000e+00 : f32
    %18 = vector.broadcast %cst_18 : f32 to vector<8x128xf32>
    %19 = arith.maximumf %17, %18 : vector<8x128xf32>
    %20 = arith.truncf %19 : vector<8x128xf32> to vector<8x128xbf16>
    %c0_19 = arith.constant 0 : index
    %c0_20 = arith.constant 0 : index
    %21 = vector.load %arg6[%c0_19, %c0_20] : memref<128x128xbf16, #tpu.memory_space<vmem>>, vector<128x128xbf16>
    %cst_21 = arith.constant dense<0.000000e+00> : vector<8x128xf32>
    %22 = tpu.matmul %20, %21, %cst_21 {dimension_numbers = #tpu.dot_dimension_numbers<[1], [0], [0], [1], [0, 0, 1, 1], [], []>} : vector<8x128xbf16>, vector<128x128xbf16>, vector<8x128xf32> -> vector<8x128xf32>
    %c0_22 = arith.constant 0 : index
    %c0_23 = arith.constant 0 : index
    %23 = vector.load %arg7[%c0_22, %c0_23] : memref<1x128xf32, #tpu.memory_space<vmem>>, vector<1x128xf32>
    %24 = vector.broadcast %23 : vector<1x128xf32> to vector<8x128xf32>
    %25 = arith.addf %22, %24 : vector<8x128xf32>
    %26 = vector.extract_strided_slice %25 {offsets = [0, 0], sizes = [8, 3], strides = [1, 1]} : vector<8x128xf32> to vector<8x3xf32>
    %c0_24 = arith.constant 0 : index
    %c0_25 = arith.constant 0 : index
    %27 = vector.load %arg8[%c0_24, %c0_25] : memref<8x3xf32, #tpu.memory_space<vmem>>, vector<8x3xf32>
    tpu.vector_store %arg8[%c0_24, %c0_25], %26 {strides = array<i32>} : memref<8x3xf32, #tpu.memory_space<vmem>>, vector<8x3xf32>,
    return
  }
  func.func @transform_0(%arg0: i32) -> (i32, i32) {
    %c0_i32 = arith.constant 0 : i32
    %c0_i32_0 = arith.constant 0 : i32
    return %arg0, %c0_i32 : i32, i32
  }
  func.func @transform_1(%arg0: i32) -> (i32, i32) {
    %c0_i32 = arith.constant 0 : i32
    %c0_i32_0 = arith.constant 0 : i32
    %c0_i32_1 = arith.constant 0 : i32
    return %c0_i32, %c0_i32_0 : i32, i32
  }
  func.func @transform_2(%arg0: i32) -> (i32, i32) {
    %c0_i32 = arith.constant 0 : i32
    %c0_i32_0 = arith.constant 0 : i32
    %c0_i32_1 = arith.constant 0 : i32
    return %c0_i32, %c0_i32_0 : i32, i32
  }
  func.func @transform_3(%arg0: i32) -> (i32, i32) {
    %c0_i32 = arith.constant 0 : i32
    %c0_i32_0 = arith.constant 0 : i32
    %c0_i32_1 = arith.constant 0 : i32
    return %c0_i32, %c0_i32_0 : i32, i32
  }
  func.func @transform_4(%arg0: i32) -> (i32, i32) {
    %c0_i32 = arith.constant 0 : i32
    %c0_i32_0 = arith.constant 0 : i32
    %c0_i32_1 = arith.constant 0 : i32
    return %c0_i32, %c0_i32_0 : i32, i32
  }
  func.func @transform_5(%arg0: i32) -> (i32, i32) {
    %c0_i32 = arith.constant 0 : i32
    %c0_i32_0 = arith.constant 0 : i32
    %c0_i32_1 = arith.constant 0 : i32
    return %c0_i32, %c0_i32_0 : i32, i32
  }
  func.func @transform_6(%arg0: i32) -> (i32, i32) {
    %c0_i32 = arith.constant 0 : i32
    %c0_i32_0 = arith.constant 0 : i32
    %c0_i32_1 = arith.constant 0 : i32
    return %c0_i32, %c0_i32_0 : i32, i32
  }
  func.func @transform_7(%arg0: i32) -> (i32, i32) {
    %c0_i32 = arith.constant 0 : i32
    %c0_i32_0 = arith.constant 0 : i32
    return %arg0, %c0_i32 : i32, i32
  }
}

</mosaic_0001>

<bundles_post_ra>
// kernel: linear_qnet_forward.1
= control target key start
LH: loop header
LB: loop body
LE: loop exit
PB: predicated region body
PF: predicated region fallthrough
CT: control target
= control target key end

     0   :  { %12 = vsyncpa [#allocation4], 0  ;;  %v469_v1 = vmov 0   ;;  %vm46_vm0 = vcmask 84992   ;;  %vm296_vm1 = vcmask 23552   ;;  %s609_s0 = inlined_call_operand.vmem [shape: bf16[2,11], index: 0, kind: input, shape index: {}]   ;;  %s610_s1 = inlined_call_operand.vmem [shape: bf16[128,128], index: 1, kind: input, shape index: {}]   ;;  %s611_s2 = inlined_call_operand.vmem [shape: f32[1,128], index: 2, kind: input, shape index: {}]   ;;  %s612_s3 = inlined_call_operand.vmem [shape: bf16[128,128], index: 3, kind: input, shape index: {}]   ;;  %s613_s4 = inlined_call_operand.vmem [shape: f32[1,128], index: 4, kind: input, shape index: {}]   ;;  %s614_s5 = inlined_call_operand.vmem [shape: bf16[128,128], index: 5, kind: input, shape index: {}]   ;;  %s615_s6 = inlined_call_operand.vmem [shape: f32[1,128], index: 6, kind: input, shape index: {}]   ;;  %s616_s7 = inlined_call_operand.hbm [shape: f32[2,3], index: 7, kind: output, shape index: {}]  }
   0x1   :  { %v419_v0 = vld [vmem:[%s610_s1 + $0x38] sm:$0xff]  ;;  %28 = vst [vmem:[#allocation2] sm:$0xf] %v469_v1  ;;  %v418_v2 = vld [vmem:[%s610_s1 + $0x30] sm:$0xff]  ;;  %v29_v3 = vld [vmem:[%s609_s0] sm:$0x1] }
   0x2   :  { %117 = vmatpush.bf16.msra.mxu0 %v419_v0  ;;  %v30_v4 = vld [vmem:[%s609_s0 + $0x1] sm:$0x1]  ;;  %v31_v5 = vld [vmem:[%s609_s0 + $0x2] sm:$0x1]  ;;  %v32_v6 = vld [vmem:[%s609_s0 + $0x3] sm:$0x1] }
   0x3   :  { %34 = vst [vmem:[#allocation1] ss:$4 sm:$0xff] %v29_v3  ;;  %v427_v7 = vld [vmem:[%s612_s3 + $0x38] sm:$0xff]  ;;  %v417_v8 = vld [vmem:[%s610_s1 + $0x28] sm:$0xff]  ;;  %v426_v9 = vld [vmem:[%s612_s3 + $0x30] sm:$0xff] }
   0x4   :  { %37 = vst [vmem:[#allocation1 + $0x1] ss:$4 sm:$0xff] %v30_v4  ;;  %200 = vmatpush.bf16.msra.mxu1 %v427_v7  ;;  %v416_v10 = vld [vmem:[%s610_s1 + $0x20] sm:$0xff]  ;;  %v425_v11 = vld [vmem:[%s612_s3 + $0x28] sm:$0xff]  ;;  %v415_v12 = vld [vmem:[%s610_s1 + $0x18] sm:$0xff] }
   0x5   :  { %40 = vst [vmem:[#allocation1 + $0x2] ss:$4 sm:$0xff] %v31_v5  ;;  %v424_v14 = vld [vmem:[%s612_s3 + $0x20] sm:$0xff]  ;;  %v414_v15 = vld [vmem:[%s610_s1 + $0x10] sm:$0xff]  ;;  %v423_v16 = vld [vmem:[%s612_s3 + $0x18] sm:$0xff] }
   0x6   :  { %118 = vmatpush.bf16.msra.mxu0 %v418_v2  ;;  %43 = vst [vmem:[#allocation1 + $0x3] ss:$4 sm:$0xff] %v32_v6  ;;  %v413_v17 = vld [vmem:[%s610_s1 + $0x8] sm:$0xff]  ;;  %v422_v18 = vld [vmem:[%s612_s3 + $0x10] sm:$0xff]  ;;  %v412_v19 = vld [vmem:[%s610_s1] sm:$0xff] }
   0x7   :  { %v421_v21 = vld [vmem:[%s612_s3 + $0x8] sm:$0xff]  ;;  %v420_v22 = vld [vmem:[%s612_s3] sm:$0xff]  ;;  %v435_v23 = vld [vmem:[%s614_s5 + $0x38] sm:$0xff] }
   0x8   :  { %201 = vmatpush.bf16.msra.mxu1 %v426_v9  ;;  %283 = vmatpush.bf16.msra.mxu2 %v435_v23  ;;  %v434_v24 = vld [vmem:[%s614_s5 + $0x30] sm:$0xff]  ;;  %v433_v25 = vld [vmem:[%s614_s5 + $0x28] sm:$0xff]  ;;  %v432_v26 = vld [vmem:[%s614_s5 + $0x20] sm:$0xff] }
   0x9   :  { %v431_v27 = vld [vmem:[%s614_s5 + $0x18] sm:$0xff]  ;;  %v430_v28 = vld [vmem:[%s614_s5 + $0x10] sm:$0xff]  ;;  %v440_v29 = vld [vmem:[%s611_s2] ss:$0 sm:$0xff] }
   0xa   :  { %119 = vmatpush.bf16.msra.mxu0 %v417_v8  ;;  %v429_v35 = vld [vmem:[%s614_s5 + $0x8] sm:$0xff]  ;;  %v428_v36 = vld [vmem:[%s614_s5] sm:$0xff] }
   0xb   :  { %v441_v37 = vld [vmem:[%s613_s4] ss:$0 sm:$0xff] }
   0xc   :  { %202 = vmatpush.bf16.msra.mxu1 %v425_v11  ;;  %284 = vmatpush.bf16.msra.mxu2 %v434_v24  ;;  %v442_v43 = vld [vmem:[%s615_s6] ss:$0 sm:$0xff] }
   0xd   :  { %v44_v13 = vld [vmem:[#allocation1] sm:$0xff] }
   0xe   :  { %120 = vmatpush.bf16.msra.mxu0 %v416_v10  ;;  %47 = vst.msk [vmem:[#allocation2] sm:$0xf] %vm46_vm0, %v44_v13 }
  0x10   :  { %203 = vmatpush.bf16.msra.mxu1 %v424_v14  ;;  %285 = vmatpush.bf16.msra.mxu2 %v433_v25 }
  0x12   :  { %121 = vmatpush.bf16.msra.mxu0 %v415_v12 }
  0x14   :  { %204 = vmatpush.bf16.msra.mxu1 %v423_v16  ;;  %286 = vmatpush.bf16.msra.mxu2 %v432_v26 }
  0x15   :  { %v48_v20 = vld [vmem:[#allocation2] sm:$0xf] }
  0x16   :  { %122 = vmatpush.bf16.msra.mxu0 %v414_v15 }
  0x18   :  { %205 = vmatpush.bf16.msra.mxu1 %v422_v18  ;;  %287 = vmatpush.bf16.msra.mxu2 %v431_v27 }
  0x1a   :  { %123 = vmatpush.bf16.msra.mxu0 %v413_v17 }
  0x1c   :  { %206 = vmatpush.bf16.msra.mxu1 %v421_v21  ;;  %288 = vmatpush.bf16.msra.mxu2 %v430_v28 }
  0x1e   :  { %124 = vmatpush.bf16.msra.mxu0 %v412_v19 }
  0x20   :  { %207 = vmatpush.bf16.msra.mxu1 %v420_v22  ;;  %289 = vmatpush.bf16.msra.mxu2 %v429_v35 }
  0x21   :  { %125 = vmatmul.bf16.vlgmr.msra.gmra.mxu0 %v48_v20 }
  0x24   :  { %290 = vmatpush.bf16.msra.mxu2 %v428_v36 }
  0x9e   :  { %v126_v30 = vpop.f32.mrf.mxu0 }
  0x9f   :  { %v127_v31 = vadd.f32 %v440_v29, %v126_v30 }
  0xa1   :  { %v130_v32 = vmax.f32 %v127_v31, 0.0 }
  0xa3   :  { %v131_v33 = vpack.c.bf16 %v130_v32, %v130_v32 }
  0xa5   :  { %208 = vmatmul.bf16.vlgmr.msra.gmra.mxu1 %v131_v33 }
  0xa6   :  { %v128_v34 = vpop.f32.mrf.mxu0 }
 0x122   :  { %v209_v38 = vpop.f32.mrf.mxu1 }
 0x123   :  { %v210_v39 = vadd.f32 %v441_v37, %v209_v38 }
 0x125   :  { %v213_v40 = vmax.f32 %v210_v39, 0.0 }
 0x127   :  { %v214_v41 = vpack.c.bf16 %v213_v40, %v213_v40 }
 0x129   :  { %291 = vmatmul.bf16.vlgmr.msra.gmra.mxu2 %v214_v41 }
 0x12a   :  { %v211_v42 = vpop.f32.mrf.mxu1 }
 0x1ac   :  { %v292_v44 = vpop.f32.mrf.mxu2 }
 0x1ad   :  { %v293_v45 = vadd.f32 %v442_v43, %v292_v44 }
 0x1af   :  { %297 = vst.msk [vmem:[#allocation3] sm:$0xff] %vm296_vm1, %v293_v45 }
 0x1b4   :  { %v294_v46 = vpop.f32.mrf.mxu2 }
 0x1b5   :  { %301 = vsyncadd [#allocation4], 96  ;;  %s304_s4 = sshll.u32 %s616_s7, 4  ;;  %s470_s13 = smov [#allocation3]   ;;  %s305_s4 = int_to_ptr.hbm [resolvable:$true] %s304_s4 }
 0x1b6   :  { %s302_s14 = sshll.u32 %s470_s13, 4  ;;  %s471_s15 = smov 32   ;;  %s303_s14 = int_to_ptr.vmem [resolvable:$true] %s302_s14 }
 0x1b7   :  { %s472_s16 = smov 2  }
 0x1b8   :  { %310 = dma.vmem_to_hbm [thread:$0]  %s303_s14, 32, %s305_s4, [#allocation4], %s471_s15, %s471_s15, %s472_s16  }
 0x1b9   :  { %467 = dma.done.wait [#allocation4], 128  }
 0x1ba   :  { %468 = vsyncadd [#allocation4], 4294967168 }
 0x1bb   :  { %315 = vsyncpa [#allocation4], 1 }

</bundles_post_ra>
